<compile_context>
chip_gen: v7x
topology: tpu7x:2x2x1
jax: 0.10.0
libtpu: 0.0.40
codegen_flags: <defaults>
</compile_context>

<pallas_src>
import functools

import jax
import jax.numpy as jnp
from jax.experimental import pallas as pl
from jax.experimental.pallas import tpu as pltpu

LN_EPS = 1e-5  # PyTorch nn.LayerNorm default


def _round_up(x, m):
    return ((x + m - 1) // m) * m


# ----------------------------------------------------------------------------
# Fused forward kernel (one grid step = one batch tile of `bt` rows)
# ----------------------------------------------------------------------------
def _ln_relu(h, g, beta):
    """LayerNorm (biased variance, eps=1e-5, two-pass) + ReLU, all in f32."""
    mean = jnp.mean(h, axis=-1, keepdims=True)
    c = h - mean
    var = jnp.mean(c * c, axis=-1, keepdims=True)
    h = c * jax.lax.rsqrt(var + LN_EPS)
    return jnp.maximum(h * g + beta, 0.0)


def _full_block(x, w_ref, b_ref, g_ref, beta_ref):
    """Linear (bf16 weights, f32 accumulate) + LayerNorm + ReLU.  Dropout = identity."""
    h = jnp.dot(x.astype(w_ref.dtype), w_ref[...],
                preferred_element_type=jnp.float32) + b_ref[...]
    return _ln_relu(h, g_ref[...], beta_ref[...])


def _fused_forward_kernel(
        total_ref,                               # (1,1) f32 SMEM: inp.sum() (library term)
        inp_ref,                                 # (bt, G)
        w1_ref, b1_ref, g1_ref, be1_ref,         # encoder block 1: G -> H
        w2_ref, b2_ref, g2_ref, be2_ref,         # encoder block 2: H -> E
        w3_ref, b3_ref, g3_ref, be3_ref,         # px_decoder: E -> H (species row in bias)
        w45_ref, b45_ref, g4_ref, be4_ref,       # [px_scale | px_drop] heads: H -> 2G
        enc_in_ref, encoded_ref, px_rate_ref, px_drop_ref):
    # Single read of inp for this batch tile.
    x = inp_ref[...]
    enc_in = jnp.log(x + 1.0)
    enc_in_ref[...] = enc_in
    total = total_ref[0, 0]                      # exp(log(inp.sum())) == inp.sum()

    h1 = _full_block(enc_in, w1_ref, b1_ref, g1_ref, be1_ref)
    encoded = _full_block(h1, w2_ref, b2_ref, g2_ref, be2_ref)
    encoded_ref[...] = encoded

    decoded = _full_block(encoded, w3_ref, b3_ref, g3_ref, be3_ref)

    # One MXU stream for both heads on `decoded`:
    #   columns [0:G)  -> px_scale (then LN + ReLU + softmax)
    #   columns [G:2G) -> px_drop  (plain Linear)
    both = jnp.dot(decoded.astype(w45_ref.dtype), w45_ref[...],
                   preferred_element_type=jnp.float32) + b45_ref[...]
    G = px_rate_ref.shape[-1]
    px_scale = _ln_relu(both[:, :G], g4_ref[...], be4_ref[...])
    px_drop_ref[...] = both[:, G:]

    # px_rate = exp(library) * softmax(px_scale, -1)   (exact reciprocal)
    m = jnp.max(px_scale, axis=-1, keepdims=True)
    e = jnp.exp(px_scale - m)
    s = jnp.sum(e, axis=-1, keepdims=True)
    px_rate_ref[...] = (total / s) * e


# ----------------------------------------------------------------------------
# Parameter init (PyTorch-like Linear init; LN gamma=1, beta=0; weights in bf16)
# ----------------------------------------------------------------------------
def _linear_init(kw, kb, fan_in, fan_out):
    bound = 1.0 / float(fan_in) ** 0.5
    w = jax.random.uniform(kw, (fan_in, fan_out), jnp.float32, -bound, bound)
    b = jax.random.uniform(kb, (1, fan_out), jnp.float32, -bound, bound)
    return w.astype(jnp.bfloat16), b


def _block_init(kw, kb, fan_in, fan_out):
    w, b = _linear_init(kw, kb, fan_in, fan_out)
    return dict(w=w, b=b,
                gamma=jnp.ones((1, fan_out), jnp.float32),
                beta=jnp.zeros((1, fan_out), jnp.float32))


def init_params(key, num_genes, hidden_dim, embed_dim, num_species):
    ks = jax.random.split(key, 11)
    w_drop, b_drop = _linear_init(ks[8], ks[9], hidden_dim, num_genes)
    return {
        "enc1": _block_init(ks[0], ks[1], num_genes, hidden_dim),
        "enc2": _block_init(ks[2], ks[3], hidden_dim, embed_dim),
        "px_dec": _block_init(ks[4], ks[5], embed_dim + num_species, hidden_dim),
        "px_scale": _block_init(ks[6], ks[7], hidden_dim, num_genes),
        "px_drop": dict(w=w_drop, b=b_drop),
        "px_rs": jax.random.normal(ks[10], (num_genes,), jnp.float32),
    }


# ----------------------------------------------------------------------------
# Forward pass (mirrors OrthologPretrainModel.forward, vae=False)
# ----------------------------------------------------------------------------
@functools.partial(jax.jit, static_argnames=("spec_idx",))
def ortholog_forward(params, inp, *, spec_idx=0):
    p = params
    B, G = inp.shape
    H = p["enc1"]["w"].shape[1]
    E = p["enc2"]["w"].shape[1]

    # TODO(synk): pad non-128-multiple production G/H/E (needs softmax/LN column masking)
    # and add a G-tile (reduction + online-softmax) grid axis for gene counts >> VMEM.
    assert G % 128 == 0 and H % 128 == 0 and E % 128 == 0, \
        "feature dims must be multiples of 128 (lane-dense blocks)"

    # ---- cheap wrapper-side prep (plain XLA ops) ----------------------------
    # species one-hot @ W collapses to adding one weight row -> fold into the bias.
    # (in the PyTorch reference np.argmax(list == str) always yields index 0)
    w_dec_full = p["px_dec"]["w"]                                   # (E + S, H) bf16
    w_dec = w_dec_full[:E, :]
    b_dec_eff = p["px_dec"]["b"] + \
        w_dec_full[E + spec_idx, :].astype(jnp.float32)[None, :]

    # fuse the two heads on `decoded` into one (H, 2G) weight -> single MXU dot
    w45 = jnp.concatenate([p["px_scale"]["w"], p["px_drop"]["w"]], axis=1)   # (H, 2G) bf16
    b45 = jnp.concatenate([p["px_scale"]["b"], p["px_drop"]["b"]], axis=1)   # (1, 2G) f32

    # library term: PyTorch computes exp(log(inp.sum())) over the WHOLE tensor.
    # Computed here (XLA) so the kernel can be batch-tiled; passed as SMEM scalar.
    total = jnp.sum(inp, dtype=jnp.float32).reshape(1, 1)

    # px_r = exp(px_rs): tiny (G,) elementwise op -> keep in XLA, out of the kernel.
    px_r = jnp.exp(p["px_rs"].astype(jnp.float32)).reshape(-1)

    # ---- batch tiling --------------------------------------------------------
    bt = min(256, _round_up(B, 8))        # up to 256-row tiles: full MXU pass per step
    B_pad = _round_up(B, bt)
    inp_p = inp if B_pad == B else jnp.pad(inp, ((0, B_pad - B), (0, 0)))
    n_tiles = B_pad // bt

    # ---- static resource estimates ------------------------------------------
    w_elems = G * H + H * E + E * H + H * 2 * G                     # bf16 weights
    vec_elems = 6 * H + 3 * E + 4 * G                               # biases / gammas / betas
    io_elems = bt * (4 * G + E)                                     # inp + 4 batch-tiled outs
    act_elems = bt * (2 * H + E + 2 * G)                            # resident intermediates
    vmem_limit_bytes = int(min(
        128 * 1024 * 1024,
        2 * (w_elems * 2 + vec_elems * 4 + io_elems * 4)            # default double-buffering
        + act_elems * 4 + (8 << 20)))                               # headroom / internal scratch

    cost = pl.CostEstimate(
        flops=2 * B_pad * w_elems,
        transcendentals=B_pad * (G + 8),
        bytes_accessed=w_elems * 2 + vec_elems * 4 + B_pad * (4 * G + E) * 4,
    )

    def _const(shape):
        # Weight / bias tiles: constant block index across the batch axis.
        return pl.BlockSpec(shape, lambda i: (0, 0))

    in_specs = [
        pl.BlockSpec(memory_space=pltpu.MemorySpace.SMEM),          # total (1,1) scalar
        pl.BlockSpec((bt, G), lambda i: (i, 0)),                    # inp batch tile
        _const((G, H)), _const((1, H)), _const((1, H)), _const((1, H)),
        _const((H, E)), _const((1, E)), _const((1, E)), _const((1, E)),
        _const((E, H)), _const((1, H)), _const((1, H)), _const((1, H)),
        _const((H, 2 * G)), _const((1, 2 * G)), _const((1, G)), _const((1, G)),
    ]
    # TODO(synk): at production G, add pipeline_mode=pl.Buffered(1) on the weight specs
    # (constant block index) to halve their VMEM residency.

    out_specs = (
        pl.BlockSpec((bt, G), lambda i: (i, 0)),                    # encoder_input
        pl.BlockSpec((bt, E), lambda i: (i, 0)),                    # encoded
        pl.BlockSpec((bt, G), lambda i: (i, 0)),                    # px_rate
        pl.BlockSpec((bt, G), lambda i: (i, 0)),                    # px_drop
    )
    out_shape = (
        jax.ShapeDtypeStruct((B_pad, G), jnp.float32),
        jax.ShapeDtypeStruct((B_pad, E), jnp.float32),
        jax.ShapeDtypeStruct((B_pad, G), jnp.float32),
        jax.ShapeDtypeStruct((B_pad, G), jnp.float32),
    )

    enc_in, encoded, px_rate, px_drop = pl.pallas_call(
        _fused_forward_kernel,
        out_shape=out_shape,
        grid=(n_tiles,),
        in_specs=in_specs,
        out_specs=out_specs,
        compiler_params=pltpu.CompilerParams(
            dimension_semantics=("parallel",),   # batch tiles independent -> megacore / 2 TCs
            vmem_limit_bytes=vmem_limit_bytes,
        ),
        cost_estimate=cost,
    )(
        total, inp_p,
        p["enc1"]["w"], p["enc1"]["b"], p["enc1"]["gamma"], p["enc1"]["beta"],
        p["enc2"]["w"], p["enc2"]["b"], p["enc2"]["gamma"], p["enc2"]["beta"],
        w_dec, b_dec_eff, p["px_dec"]["gamma"], p["px_dec"]["beta"],
        w45, b45, p["px_scale"]["gamma"], p["px_scale"]["beta"],
    )

    if B_pad != B:
        enc_in, encoded, px_rate, px_drop = (
            enc_in[:B], encoded[:B], px_rate[:B], px_drop[:B])

    # TODO(synk): vae=True branch (fc_mu / fc_var + reparameterize) needs in-kernel RNG;
    # this mirrors the vae=False forward path only.
    mu = None
    log_var = None
    return enc_in, encoded, mu, log_var, px_rate, px_r, px_drop


# ----------------------------------------------------------------------------
# Pure-JAX mirror of the PyTorch forward (same bf16 weight casts) for validation
# ----------------------------------------------------------------------------
def _reference_forward(params, inp, spec_idx=0):
    p = params
    E = p["enc2"]["w"].shape[1]
    S = p["px_dec"]["w"].shape[0] - E

    def block(x, q):
        h = jnp.dot(x.astype(jnp.bfloat16), q["w"],
                    preferred_element_type=jnp.float32) + q["b"]
        mean = jnp.mean(h, -1, keepdims=True)
        var = jnp.mean((h - mean) ** 2, -1, keepdims=True)
        h = (h - mean) / jnp.sqrt(var + LN_EPS) * q["gamma"] + q["beta"]
        return jnp.maximum(h, 0.0)

    enc_in = jnp.log(inp + 1.0)
    h1 = block(enc_in, p["enc1"])
    encoded = block(h1, p["enc2"])
    one_hot = jnp.zeros((inp.shape[0], S), jnp.float32).at[:, spec_idx].set(1.0)
    decoded = block(jnp.concatenate([encoded, one_hot], axis=1), p["px_dec"])
    px_scale = block(decoded, p["px_scale"])
    px_drop = jnp.dot(decoded.astype(jnp.bfloat16), p["px_drop"]["w"],
                      preferred_element_type=jnp.float32) + p["px_drop"]["b"]
    px_rate = jnp.sum(inp) * jax.nn.softmax(px_scale, axis=-1)
    px_r = jnp.exp(p["px_rs"]).reshape(-1)
    return enc_in, encoded, px_rate, px_r, px_drop


# ----------------------------------------------------------------------------
# Demo
# ----------------------------------------------------------------------------
if __name__ == "__main__":
    # Small but lane/sublane-dense demo shapes: batch % 8 == 0, features % 128 == 0.
    NUM_GENES = 256    # input_dim
    HIDDEN = 128       # hidden_dim
    EMBED = 128        # embed_dim
    NUM_SPECIES = 3    # len(species_names)
    BATCH = 8

    key = jax.random.PRNGKey(0)
    k_params, k_inp = jax.random.split(key)

    params = init_params(k_params, NUM_GENES, HIDDEN, EMBED, NUM_SPECIES)
    # Synthetic non-negative "expression counts"
    inp = jax.random.uniform(k_inp, (BATCH, NUM_GENES), jnp.float32, 0.0, 10.0)

    outs = ortholog_forward(params, inp, spec_idx=0)
    encoder_input, encoded, mu, log_var, px_rate, px_r, px_drop = outs
    jax.block_until_ready((encoder_input, encoded, px_rate, px_r, px_drop))

    assert encoder_input.shape == (BATCH, NUM_GENES)
    assert encoded.shape == (BATCH, EMBED)
    assert px_rate.shape == (BATCH, NUM_GENES)
    assert px_r.shape == (NUM_GENES,)
    assert px_drop.shape == (BATCH, NUM_GENES)
    assert bool(jnp.all(jnp.isfinite(px_rate)))
    assert bool(jnp.all(jnp.isfinite(px_drop)))

    # Numerical check against the pure-JAX mirror of the PyTorch forward.
    r_enc_in, r_encoded, r_px_rate, r_px_r, r_px_drop = _reference_forward(params, inp, 0)
    for got, ref in ((encoder_input, r_enc_in), (encoded, r_encoded),
                     (px_rate, r_px_rate), (px_r, r_px_r), (px_drop, r_px_drop)):
        assert bool(jnp.allclose(got, ref, rtol=2e-2, atol=2e-2)), \
            f"max abs err {float(jnp.max(jnp.abs(got - ref)))}"

    print("KERNEL_OK")
</pallas_src>

<mosaic_0001>
module attributes {stable_mosaic.version = 11 : i64} {
  func.func @_fused_forward_kernel(%arg0: i32, %arg1: memref<1x1xf32, #tpu.memory_space<smem>>, %arg2: memref<8x256xf32, #tpu.memory_space<vmem>>, %arg3: memref<256x128xbf16, #tpu.memory_space<vmem>>, %arg4: memref<1x128xf32, #tpu.memory_space<vmem>>, %arg5: memref<1x128xf32, #tpu.memory_space<vmem>>, %arg6: memref<1x128xf32, #tpu.memory_space<vmem>>, %arg7: memref<128x128xbf16, #tpu.memory_space<vmem>>, %arg8: memref<1x128xf32, #tpu.memory_space<vmem>>, %arg9: memref<1x128xf32, #tpu.memory_space<vmem>>, %arg10: memref<1x128xf32, #tpu.memory_space<vmem>>, %arg11: memref<128x128xbf16, #tpu.memory_space<vmem>>, %arg12: memref<1x128xf32, #tpu.memory_space<vmem>>, %arg13: memref<1x128xf32, #tpu.memory_space<vmem>>, %arg14: memref<1x128xf32, #tpu.memory_space<vmem>>, %arg15: memref<128x512xbf16, #tpu.memory_space<vmem>>, %arg16: memref<1x512xf32, #tpu.memory_space<vmem>>, %arg17: memref<1x256xf32, #tpu.memory_space<vmem>>, %arg18: memref<1x256xf32, #tpu.memory_space<vmem>>, %arg19: memref<8x256xf32, #tpu.memory_space<vmem>>, %arg20: memref<8x128xf32, #tpu.memory_space<vmem>>, %arg21: memref<8x256xf32, #tpu.memory_space<vmem>>, %arg22: memref<8x256xf32, #tpu.memory_space<vmem>>) attributes {dimension_semantics = [#tpu.dimension_semantics<parallel>], iteration_bounds = array<i64: 1>, scalar_prefetch = 0 : i64, scratch_operands = 0 : i64, tpu.core_type = #tpu.core_type<tc>, window_params = [{transform_indices = @transform_0, window_bounds = array<i64: 1, 1>}, {transform_indices = @transform_1, window_bounds = array<i64: 8, 256>}, {pipeline_mode = #tpu.pipeline_mode<synchronous>, transform_indices = @transform_2, window_bounds = array<i64: 256, 128>}, {pipeline_mode = #tpu.pipeline_mode<synchronous>, transform_indices = @transform_3, window_bounds = array<i64: 1, 128>}, {pipeline_mode = #tpu.pipeline_mode<synchronous>, transform_indices = @transform_4, window_bounds = array<i64: 1, 128>}, {pipeline_mode = #tpu.pipeline_mode<synchronous>, transform_indices = @transform_5, window_bounds = array<i64: 1, 128>}, {pipeline_mode = #tpu.pipeline_mode<synchronous>, transform_indices = @transform_6, window_bounds = array<i64: 128, 128>}, {pipeline_mode = #tpu.pipeline_mode<synchronous>, transform_indices = @transform_7, window_bounds = array<i64: 1, 128>}, {pipeline_mode = #tpu.pipeline_mode<synchronous>, transform_indices = @transform_8, window_bounds = array<i64: 1, 128>}, {pipeline_mode = #tpu.pipeline_mode<synchronous>, transform_indices = @transform_9, window_bounds = array<i64: 1, 128>}, {pipeline_mode = #tpu.pipeline_mode<synchronous>, transform_indices = @transform_10, window_bounds = array<i64: 128, 128>}, {pipeline_mode = #tpu.pipeline_mode<synchronous>, transform_indices = @transform_11, window_bounds = array<i64: 1, 128>}, {pipeline_mode = #tpu.pipeline_mode<synchronous>, transform_indices = @transform_12, window_bounds = array<i64: 1, 128>}, {pipeline_mode = #tpu.pipeline_mode<synchronous>, transform_indices = @transform_13, window_bounds = array<i64: 1, 128>}, {pipeline_mode = #tpu.pipeline_mode<synchronous>, transform_indices = @transform_14, window_bounds = array<i64: 128, 512>}, {pipeline_mode = #tpu.pipeline_mode<synchronous>, transform_indices = @transform_15, window_bounds = array<i64: 1, 512>}, {pipeline_mode = #tpu.pipeline_mode<synchronous>, transform_indices = @transform_16, window_bounds = array<i64: 1, 256>}, {pipeline_mode = #tpu.pipeline_mode<synchronous>, transform_indices = @transform_17, window_bounds = array<i64: 1, 256>}, {transform_indices = @transform_18, window_bounds = array<i64: 8, 256>}, {transform_indices = @transform_19, window_bounds = array<i64: 8, 128>}, {transform_indices = @transform_20, window_bounds = array<i64: 8, 256>}, {transform_indices = @transform_21, window_bounds = array<i64: 8, 256>}]} {
    %c0 = arith.constant 0 : index
    %c0_0 = arith.constant 0 : index
    %0 = vector.load %arg2[%c0, %c0_0] : memref<8x256xf32, #tpu.memory_space<vmem>>, vector<8x256xf32>
    %cst = arith.constant 1.000000e+00 : f32
    %1 = vector.broadcast %cst : f32 to vector<8x256xf32>
    %2 = arith.addf %0, %1 : vector<8x256xf32>
    %3 = math.log %2 : vector<8x256xf32>
    %c0_1 = arith.constant 0 : index
    %c0_2 = arith.constant 0 : index
    %4 = vector.load %arg19[%c0_1, %c0_2] : memref<8x256xf32, #tpu.memory_space<vmem>>, vector<8x256xf32>
    tpu.vector_store %arg19[%c0_1, %c0_2], %3 {strides = array<i32>} : memref<8x256xf32, #tpu.memory_space<vmem>>, vector<8x256xf32>,
    %c0_3 = arith.constant 0 : index
    %c0_4 = arith.constant 0 : index
    %5 = memref.load %arg1[%c0_3, %c0_4] : memref<1x1xf32, #tpu.memory_space<smem>>
    %6 = arith.truncf %3 : vector<8x256xf32> to vector<8x256xbf16>
    %c0_5 = arith.constant 0 : index
    %c0_6 = arith.constant 0 : index
    %7 = vector.load %arg3[%c0_5, %c0_6] : memref<256x128xbf16, #tpu.memory_space<vmem>>, vector<256x128xbf16>
    %cst_7 = arith.constant dense<0.000000e+00> : vector<8x128xf32>
    %8 = tpu.matmul %6, %7, %cst_7 {dimension_numbers = #tpu.dot_dimension_numbers<[1], [0], [0], [1], [0, 0, 1, 1], [], []>} : vector<8x256xbf16>, vector<256x128xbf16>, vector<8x128xf32> -> vector<8x128xf32>
    %c0_8 = arith.constant 0 : index
    %c0_9 = arith.constant 0 : index
    %9 = vector.load %arg4[%c0_8, %c0_9] : memref<1x128xf32, #tpu.memory_space<vmem>>, vector<1x128xf32>
    %10 = vector.broadcast %9 : vector<1x128xf32> to vector<8x128xf32>
    %11 = arith.addf %8, %10 : vector<8x128xf32>
    %c0_10 = arith.constant 0 : index
    %c0_11 = arith.constant 0 : index
    %12 = vector.load %arg5[%c0_10, %c0_11] : memref<1x128xf32, #tpu.memory_space<vmem>>, vector<1x128xf32>
    %c0_12 = arith.constant 0 : index
    %c0_13 = arith.constant 0 : index
    %13 = vector.load %arg6[%c0_12, %c0_13] : memref<1x128xf32, #tpu.memory_space<vmem>>, vector<1x128xf32>
    %cst_14 = arith.constant dense<0.000000e+00> : vector<8xf32>
    %14 = vector.multi_reduction <add>, %11, %cst_14 [1] : vector<8x128xf32> to vector<8xf32>
    %15 = vector.shape_cast %14 : vector<8xf32> to vector<8x1xf32>
    %cst_15 = arith.constant 1.280000e+02 : f32
    %16 = vector.broadcast %cst_15 : f32 to vector<8x1xf32>
    %17 = arith.divf %15, %16 : vector<8x1xf32>
    %18 = vector.broadcast %17 : vector<8x1xf32> to vector<8x128xf32>
    %19 = arith.subf %11, %18 : vector<8x128xf32>
    %20 = arith.mulf %19, %19 : vector<8x128xf32>
    %cst_16 = arith.constant dense<0.000000e+00> : vector<8xf32>
    %21 = vector.multi_reduction <add>, %20, %cst_16 [1] : vector<8x128xf32> to vector<8xf32>
    %22 = vector.shape_cast %21 : vector<8xf32> to vector<8x1xf32>
    %cst_17 = arith.constant 1.280000e+02 : f32
    %23 = vector.broadcast %cst_17 : f32 to vector<8x1xf32>
    %24 = arith.divf %22, %23 : vector<8x1xf32>
    %cst_18 = arith.constant 9.99999974E-6 : f32
    %25 = vector.broadcast %cst_18 : f32 to vector<8x1xf32>
    %26 = arith.addf %24, %25 : vector<8x1xf32>
    %27 = math.rsqrt %26 : vector<8x1xf32>
    %28 = vector.broadcast %27 : vector<8x1xf32> to vector<8x128xf32>
    %29 = arith.mulf %19, %28 : vector<8x128xf32>
    %30 = vector.broadcast %12 : vector<1x128xf32> to vector<8x128xf32>
    %31 = arith.mulf %29, %30 : vector<8x128xf32>
    %32 = vector.broadcast %13 : vector<1x128xf32> to vector<8x128xf32>
    %33 = arith.addf %31, %32 : vector<8x128xf32>
    %cst_19 = arith.constant 0.000000e+00 : f32
    %34 = vector.broadcast %cst_19 : f32 to vector<8x128xf32>
    %35 = arith.maximumf %33, %34 : vector<8x128xf32>
    %36 = arith.truncf %35 : vector<8x128xf32> to vector<8x128xbf16>
    %c0_20 = arith.constant 0 : index
    %c0_21 = arith.constant 0 : index
    %37 = vector.load %arg7[%c0_20, %c0_21] : memref<128x128xbf16, #tpu.memory_space<vmem>>, vector<128x128xbf16>
    %cst_22 = arith.constant dense<0.000000e+00> : vector<8x128xf32>
    %38 = tpu.matmul %36, %37, %cst_22 {dimension_numbers = #tpu.dot_dimension_numbers<[1], [0], [0], [1], [0, 0, 1, 1], [], []>} : vector<8x128xbf16>, vector<128x128xbf16>, vector<8x128xf32> -> vector<8x128xf32>
    %c0_23 = arith.constant 0 : index
    %c0_24 = arith.constant 0 : index
    %39 = vector.load %arg8[%c0_23, %c0_24] : memref<1x128xf32, #tpu.memory_space<vmem>>, vector<1x128xf32>
    %40 = vector.broadcast %39 : vector<1x128xf32> to vector<8x128xf32>
    %41 = arith.addf %38, %40 : vector<8x128xf32>
    %c0_25 = arith.constant 0 : index
    %c0_26 = arith.constant 0 : index
    %42 = vector.load %arg9[%c0_25, %c0_26] : memref<1x128xf32, #tpu.memory_space<vmem>>, vector<1x128xf32>
    %c0_27 = arith.constant 0 : index
    %c0_28 = arith.constant 0 : index
    %43 = vector.load %arg10[%c0_27, %c0_28] : memref<1x128xf32, #tpu.memory_space<vmem>>, vector<1x128xf32>
    %cst_29 = arith.constant dense<0.000000e+00> : vector<8xf32>
    %44 = vector.multi_reduction <add>, %41, %cst_29 [1] : vector<8x128xf32> to vector<8xf32>
    %45 = vector.shape_cast %44 : vector<8xf32> to vector<8x1xf32>
    %cst_30 = arith.constant 1.280000e+02 : f32
    %46 = vector.broadcast %cst_30 : f32 to vector<8x1xf32>
    %47 = arith.divf %45, %46 : vector<8x1xf32>
    %48 = vector.broadcast %47 : vector<8x1xf32> to vector<8x128xf32>
    %49 = arith.subf %41, %48 : vector<8x128xf32>
    %50 = arith.mulf %49, %49 : vector<8x128xf32>
    %cst_31 = arith.constant dense<0.000000e+00> : vector<8xf32>
    %51 = vector.multi_reduction <add>, %50, %cst_31 [1] : vector<8x128xf32> to vector<8xf32>
    %52 = vector.shape_cast %51 : vector<8xf32> to vector<8x1xf32>
    %cst_32 = arith.constant 1.280000e+02 : f32
    %53 = vector.broadcast %cst_32 : f32 to vector<8x1xf32>
    %54 = arith.divf %52, %53 : vector<8x1xf32>
    %cst_33 = arith.constant 9.99999974E-6 : f32
    %55 = vector.broadcast %cst_33 : f32 to vector<8x1xf32>
    %56 = arith.addf %54, %55 : vector<8x1xf32>
    %57 = math.rsqrt %56 : vector<8x1xf32>
    %58 = vector.broadcast %57 : vector<8x1xf32> to vector<8x128xf32>
    %59 = arith.mulf %49, %58 : vector<8x128xf32>
    %60 = vector.broadcast %42 : vector<1x128xf32> to vector<8x128xf32>
    %61 = arith.mulf %59, %60 : vector<8x128xf32>
    %62 = vector.broadcast %43 : vector<1x128xf32> to vector<8x128xf32>
    %63 = arith.addf %61, %62 : vector<8x128xf32>
    %cst_34 = arith.constant 0.000000e+00 : f32
    %64 = vector.broadcast %cst_34 : f32 to vector<8x128xf32>
    %65 = arith.maximumf %63, %64 : vector<8x128xf32>
    %c0_35 = arith.constant 0 : index
    %c0_36 = arith.constant 0 : index
    %66 = vector.load %arg20[%c0_35, %c0_36] : memref<8x128xf32, #tpu.memory_space<vmem>>, vector<8x128xf32>
    tpu.vector_store %arg20[%c0_35, %c0_36], %65 {strides = array<i32>} : memref<8x128xf32, #tpu.memory_space<vmem>>, vector<8x128xf32>,
    %67 = arith.truncf %65 : vector<8x128xf32> to vector<8x128xbf16>
    %c0_37 = arith.constant 0 : index
    %c0_38 = arith.constant 0 : index
    %68 = vector.load %arg11[%c0_37, %c0_38] : memref<128x128xbf16, #tpu.memory_space<vmem>>, vector<128x128xbf16>
    %cst_39 = arith.constant dense<0.000000e+00> : vector<8x128xf32>
    %69 = tpu.matmul %67, %68, %cst_39 {dimension_numbers = #tpu.dot_dimension_numbers<[1], [0], [0], [1], [0, 0, 1, 1], [], []>} : vector<8x128xbf16>, vector<128x128xbf16>, vector<8x128xf32> -> vector<8x128xf32>
    %c0_40 = arith.constant 0 : index
    %c0_41 = arith.constant 0 : index
    %70 = vector.load %arg12[%c0_40, %c0_41] : memref<1x128xf32, #tpu.memory_space<vmem>>, vector<1x128xf32>
    %71 = vector.broadcast %70 : vector<1x128xf32> to vector<8x128xf32>
    %72 = arith.addf %69, %71 : vector<8x128xf32>
    %c0_42 = arith.constant 0 : index
    %c0_43 = arith.constant 0 : index
    %73 = vector.load %arg13[%c0_42, %c0_43] : memref<1x128xf32, #tpu.memory_space<vmem>>, vector<1x128xf32>
    %c0_44 = arith.constant 0 : index
    %c0_45 = arith.constant 0 : index
    %74 = vector.load %arg14[%c0_44, %c0_45] : memref<1x128xf32, #tpu.memory_space<vmem>>, vector<1x128xf32>
    %cst_46 = arith.constant dense<0.000000e+00> : vector<8xf32>
    %75 = vector.multi_reduction <add>, %72, %cst_46 [1] : vector<8x128xf32> to vector<8xf32>
    %76 = vector.shape_cast %75 : vector<8xf32> to vector<8x1xf32>
    %cst_47 = arith.constant 1.280000e+02 : f32
    %77 = vector.broadcast %cst_47 : f32 to vector<8x1xf32>
    %78 = arith.divf %76, %77 : vector<8x1xf32>
    %79 = vector.broadcast %78 : vector<8x1xf32> to vector<8x128xf32>
    %80 = arith.subf %72, %79 : vector<8x128xf32>
    %81 = arith.mulf %80, %80 : vector<8x128xf32>
    %cst_48 = arith.constant dense<0.000000e+00> : vector<8xf32>
    %82 = vector.multi_reduction <add>, %81, %cst_48 [1] : vector<8x128xf32> to vector<8xf32>
    %83 = vector.shape_cast %82 : vector<8xf32> to vector<8x1xf32>
    %cst_49 = arith.constant 1.280000e+02 : f32
    %84 = vector.broadcast %cst_49 : f32 to vector<8x1xf32>
    %85 = arith.divf %83, %84 : vector<8x1xf32>
    %cst_50 = arith.constant 9.99999974E-6 : f32
    %86 = vector.broadcast %cst_50 : f32 to vector<8x1xf32>
    %87 = arith.addf %85, %86 : vector<8x1xf32>
    %88 = math.rsqrt %87 : vector<8x1xf32>
    %89 = vector.broadcast %88 : vector<8x1xf32> to vector<8x128xf32>
    %90 = arith.mulf %80, %89 : vector<8x128xf32>
    %91 = vector.broadcast %73 : vector<1x128xf32> to vector<8x128xf32>
    %92 = arith.mulf %90, %91 : vector<8x128xf32>
    %93 = vector.broadcast %74 : vector<1x128xf32> to vector<8x128xf32>
    %94 = arith.addf %92, %93 : vector<8x128xf32>
    %cst_51 = arith.constant 0.000000e+00 : f32
    %95 = vector.broadcast %cst_51 : f32 to vector<8x128xf32>
    %96 = arith.maximumf %94, %95 : vector<8x128xf32>
    %97 = arith.truncf %96 : vector<8x128xf32> to vector<8x128xbf16>
    %c0_52 = arith.constant 0 : index
    %c0_53 = arith.constant 0 : index
    %98 = vector.load %arg15[%c0_52, %c0_53] : memref<128x512xbf16, #tpu.memory_space<vmem>>, vector<128x512xbf16>
    %cst_54 = arith.constant dense<0.000000e+00> : vector<8x512xf32>
    %99 = tpu.matmul %97, %98, %cst_54 {dimension_numbers = #tpu.dot_dimension_numbers<[1], [0], [0], [1], [0, 0, 1, 1], [], []>} : vector<8x128xbf16>, vector<128x512xbf16>, vector<8x512xf32> -> vector<8x512xf32>
    %c0_55 = arith.constant 0 : index
    %c0_56 = arith.constant 0 : index
    %100 = vector.load %arg16[%c0_55, %c0_56] : memref<1x512xf32, #tpu.memory_space<vmem>>, vector<1x512xf32>
    %101 = vector.broadcast %100 : vector<1x512xf32> to vector<8x512xf32>
    %102 = arith.addf %99, %101 : vector<8x512xf32>
    %103 = vector.extract_strided_slice %102 {offsets = [0, 0], sizes = [8, 256], strides = [1, 1]} : vector<8x512xf32> to vector<8x256xf32>
    %c0_57 = arith.constant 0 : index
    %c0_58 = arith.constant 0 : index
    %104 = vector.load %arg17[%c0_57, %c0_58] : memref<1x256xf32, #tpu.memory_space<vmem>>, vector<1x256xf32>
    %c0_59 = arith.constant 0 : index
    %c0_60 = arith.constant 0 : index
    %105 = vector.load %arg18[%c0_59, %c0_60] : memref<1x256xf32, #tpu.memory_space<vmem>>, vector<1x256xf32>
    %cst_61 = arith.constant dense<0.000000e+00> : vector<8xf32>
    %106 = vector.multi_reduction <add>, %103, %cst_61 [1] : vector<8x256xf32> to vector<8xf32>
    %107 = vector.shape_cast %106 : vector<8xf32> to vector<8x1xf32>
    %cst_62 = arith.constant 2.560000e+02 : f32
    %108 = vector.broadcast %cst_62 : f32 to vector<8x1xf32>
    %109 = arith.divf %107, %108 : vector<8x1xf32>
    %110 = vector.broadcast %109 : vector<8x1xf32> to vector<8x256xf32>
    %111 = arith.subf %103, %110 : vector<8x256xf32>
    %112 = arith.mulf %111, %111 : vector<8x256xf32>
    %cst_63 = arith.constant dense<0.000000e+00> : vector<8xf32>
    %113 = vector.multi_reduction <add>, %112, %cst_63 [1] : vector<8x256xf32> to vector<8xf32>
    %114 = vector.shape_cast %113 : vector<8xf32> to vector<8x1xf32>
    %cst_64 = arith.constant 2.560000e+02 : f32
    %115 = vector.broadcast %cst_64 : f32 to vector<8x1xf32>
    %116 = arith.divf %114, %115 : vector<8x1xf32>
    %cst_65 = arith.constant 9.99999974E-6 : f32
    %117 = vector.broadcast %cst_65 : f32 to vector<8x1xf32>
    %118 = arith.addf %116, %117 : vector<8x1xf32>
    %119 = math.rsqrt %118 : vector<8x1xf32>
    %120 = vector.broadcast %119 : vector<8x1xf32> to vector<8x256xf32>
    %121 = arith.mulf %111, %120 : vector<8x256xf32>
    %122 = vector.broadcast %104 : vector<1x256xf32> to vector<8x256xf32>
    %123 = arith.mulf %121, %122 : vector<8x256xf32>
    %124 = vector.broadcast %105 : vector<1x256xf32> to vector<8x256xf32>
    %125 = arith.addf %123, %124 : vector<8x256xf32>
    %cst_66 = arith.constant 0.000000e+00 : f32
    %126 = vector.broadcast %cst_66 : f32 to vector<8x256xf32>
    %127 = arith.maximumf %125, %126 : vector<8x256xf32>
    %128 = vector.extract_strided_slice %102 {offsets = [0, 256], sizes = [8, 256], strides = [1, 1]} : vector<8x512xf32> to vector<8x256xf32>
    %c0_67 = arith.constant 0 : index
    %c0_68 = arith.constant 0 : index
    %129 = vector.load %arg22[%c0_67, %c0_68] : memref<8x256xf32, #tpu.memory_space<vmem>>, vector<8x256xf32>
    tpu.vector_store %arg22[%c0_67, %c0_68], %128 {strides = array<i32>} : memref<8x256xf32, #tpu.memory_space<vmem>>, vector<8x256xf32>,
    %cst_69 = arith.constant dense<0xFF800000> : vector<8xf32>
    %130 = vector.multi_reduction <maximumf>, %127, %cst_69 [1] : vector<8x256xf32> to vector<8xf32>
    %131 = vector.shape_cast %130 : vector<8xf32> to vector<8x1xf32>
    %132 = vector.broadcast %131 : vector<8x1xf32> to vector<8x256xf32>
    %133 = arith.subf %127, %132 : vector<8x256xf32>
    %134 = math.exp %133 : vector<8x256xf32>
    %cst_70 = arith.constant dense<0.000000e+00> : vector<8xf32>
    %135 = vector.multi_reduction <add>, %134, %cst_70 [1] : vector<8x256xf32> to vector<8xf32>
    %136 = vector.shape_cast %135 : vector<8xf32> to vector<8x1xf32>
    %137 = vector.broadcast %5 : f32 to vector<8x1xf32>
    %138 = arith.divf %137, %136 : vector<8x1xf32>
    %139 = vector.broadcast %138 : vector<8x1xf32> to vector<8x256xf32>
    %140 = arith.mulf %139, %134 : vector<8x256xf32>
    %c0_71 = arith.constant 0 : index
    %c0_72 = arith.constant 0 : index
    %141 = vector.load %arg21[%c0_71, %c0_72] : memref<8x256xf32, #tpu.memory_space<vmem>>, vector<8x256xf32>
    tpu.vector_store %arg21[%c0_71, %c0_72], %140 {strides = array<i32>} : memref<8x256xf32, #tpu.memory_space<vmem>>, vector<8x256xf32>,
    return
  }
  func.func @transform_0(%arg0: i32) -> (i32, i32) {
    %c0_i32 = arith.constant 0 : i32
    %c0_i32_0 = arith.constant 0 : i32
    %c0_i32_1 = arith.constant 0 : i32
    return %c0_i32, %c0_i32_0 : i32, i32
  }
  func.func @transform_1(%arg0: i32) -> (i32, i32) {
    %c0_i32 = arith.constant 0 : i32
    %c0_i32_0 = arith.constant 0 : i32
    return %arg0, %c0_i32 : i32, i32
  }
  func.func @transform_2(%arg0: i32) -> (i32, i32) {
    %c0_i32 = arith.constant 0 : i32
    %c0_i32_0 = arith.constant 0 : i32
    %c0_i32_1 = arith.constant 0 : i32
    return %c0_i32, %c0_i32_0 : i32, i32
  }
  func.func @transform_3(%arg0: i32) -> (i32, i32) {
    %c0_i32 = arith.constant 0 : i32
    %c0_i32_0 = arith.constant 0 : i32
    %c0_i32_1 = arith.constant 0 : i32
    return %c0_i32, %c0_i32_0 : i32, i32
  }
  func.func @transform_4(%arg0: i32) -> (i32, i32) {
    %c0_i32 = arith.constant 0 : i32
    %c0_i32_0 = arith.constant 0 : i32
    %c0_i32_1 = arith.constant 0 : i32
    return %c0_i32, %c0_i32_0 : i32, i32
  }
  func.func @transform_5(%arg0: i32) -> (i32, i32) {
    %c0_i32 = arith.constant 0 : i32
    %c0_i32_0 = arith.constant 0 : i32
    %c0_i32_1 = arith.constant 0 : i32
    return %c0_i32, %c0_i32_0 : i32, i32
  }
  func.func @transform_6(%arg0: i32) -> (i32, i32) {
    %c0_i32 = arith.constant 0 : i32
    %c0_i32_0 = arith.constant 0 : i32
    %c0_i32_1 = arith.constant 0 : i32
    return %c0_i32, %c0_i32_0 : i32, i32
  }
  func.func @transform_7(%arg0: i32) -> (i32, i32) {
    %c0_i32 = arith.constant 0 : i32
    %c0_i32_0 = arith.constant 0 : i32
    %c0_i32_1 = arith.constant 0 : i32
    return %c0_i32, %c0_i32_0 : i32, i32
  }
  func.func @transform_8(%arg0: i32) -> (i32, i32) {
    %c0_i32 = arith.constant 0 : i32
    %c0_i32_0 = arith.constant 0 : i32
    %c0_i32_1 = arith.constant 0 : i32
    return %c0_i32, %c0_i32_0 : i32, i32
  }
  func.func @transform_9(%arg0: i32) -> (i32, i32) {
    %c0_i32 = arith.constant 0 : i32
    %c0_i32_0 = arith.constant 0 : i32
    %c0_i32_1 = arith.constant 0 : i32
    return %c0_i32, %c0_i32_0 : i32, i32
  }
  func.func @transform_10(%arg0: i32) -> (i32, i32) {
    %c0_i32 = arith.constant 0 : i32
    %c0_i32_0 = arith.constant 0 : i32
    %c0_i32_1 = arith.constant 0 : i32
    return %c0_i32, %c0_i32_0 : i32, i32
  }
  func.func @transform_11(%arg0: i32) -> (i32, i32) {
    %c0_i32 = arith.constant 0 : i32
    %c0_i32_0 = arith.constant 0 : i32
    %c0_i32_1 = arith.constant 0 : i32
    return %c0_i32, %c0_i32_0 : i32, i32
  }
  func.func @transform_12(%arg0: i32) -> (i32, i32) {
    %c0_i32 = arith.constant 0 : i32
    %c0_i32_0 = arith.constant 0 : i32
    %c0_i32_1 = arith.constant 0 : i32
    return %c0_i32, %c0_i32_0 : i32, i32
  }
  func.func @transform_13(%arg0: i32) -> (i32, i32) {
    %c0_i32 = arith.constant 0 : i32
    %c0_i32_0 = arith.constant 0 : i32
    %c0_i32_1 = arith.constant 0 : i32
    return %c0_i32, %c0_i32_0 : i32, i32
  }
  func.func @transform_14(%arg0: i32) -> (i32, i32) {
    %c0_i32 = arith.constant 0 : i32
    %c0_i32_0 = arith.constant 0 : i32
    %c0_i32_1 = arith.constant 0 : i32
    return %c0_i32, %c0_i32_0 : i32, i32
  }
  func.func @transform_15(%arg0: i32) -> (i32, i32) {
    %c0_i32 = arith.constant 0 : i32
    %c0_i32_0 = arith.constant 0 : i32
    %c0_i32_1 = arith.constant 0 : i32
    return %c0_i32, %c0_i32_0 : i32, i32
  }
  func.func @transform_16(%arg0: i32) -> (i32, i32) {
    %c0_i32 = arith.constant 0 : i32
    %c0_i32_0 = arith.constant 0 : i32
    %c0_i32_1 = arith.constant 0 : i32
    return %c0_i32, %c0_i32_0 : i32, i32
  }
  func.func @transform_17(%arg0: i32) -> (i32, i32) {
    %c0_i32 = arith.constant 0 : i32
    %c0_i32_0 = arith.constant 0 : i32
    %c0_i32_1 = arith.constant 0 : i32
    return %c0_i32, %c0_i32_0 : i32, i32
  }
  func.func @transform_18(%arg0: i32) -> (i32, i32) {
    %c0_i32 = arith.constant 0 : i32
    %c0_i32_0 = arith.constant 0 : i32
    return %arg0, %c0_i32 : i32, i32
  }
  func.func @transform_19(%arg0: i32) -> (i32, i32) {
    %c0_i32 = arith.constant 0 : i32
    %c0_i32_0 = arith.constant 0 : i32
    return %arg0, %c0_i32 : i32, i32
  }
  func.func @transform_20(%arg0: i32) -> (i32, i32) {
    %c0_i32 = arith.constant 0 : i32
    %c0_i32_0 = arith.constant 0 : i32
    return %arg0, %c0_i32 : i32, i32
  }
  func.func @transform_21(%arg0: i32) -> (i32, i32) {
    %c0_i32 = arith.constant 0 : i32
    %c0_i32_0 = arith.constant 0 : i32
    return %arg0, %c0_i32 : i32, i32
  }
}

</mosaic_0001>

<bundles_post_ra>
// kernel: ortholog_forward.1
= control target key start
LH: loop header
LB: loop body
LE: loop exit
PB: predicated region body
PF: predicated region fallthrough
CT: control target
= control target key end

     0   :  { %s1758_s0 = inlined_call_operand.<no memory space> [shape: f32[1,1], index: 0, kind: input, shape index: {}]   ;;  %s1759_s1 = inlined_call_operand.vmem [shape: f32[8,256], index: 1, kind: input, shape index: {}]   ;;  %s1760_s2 = inlined_call_operand.vmem [shape: bf16[256,128], index: 2, kind: input, shape index: {}]   ;;  %s1761_s3 = inlined_call_operand.vmem [shape: f32[1,128], index: 3, kind: input, shape index: {}]   ;;  %s1762_s4 = inlined_call_operand.vmem [shape: f32[1,128], index: 4, kind: input, shape index: {}]   ;;  %s1763_s5 = inlined_call_operand.vmem [shape: f32[1,128], index: 5, kind: input, shape index: {}]   ;;  %s1764_s6 = inlined_call_operand.vmem [shape: bf16[128,128], index: 6, kind: input, shape index: {}]   ;;  %s1765_s7 = inlined_call_operand.vmem [shape: f32[1,128], index: 7, kind: input, shape index: {}]   ;;  %s1766_s8 = inlined_call_operand.vmem [shape: f32[1,128], index: 8, kind: input, shape index: {}]   ;;  %s1767_s9 = inlined_call_operand.vmem [shape: f32[1,128], index: 9, kind: input, shape index: {}]   ;;  %s1768_s10 = inlined_call_operand.vmem [shape: bf16[128,128], index: 10, kind: input, shape index: {}]   ;;  %s1769_s11 = inlined_call_operand.vmem [shape: f32[1,128], index: 11, kind: input, shape index: {}]   ;;  %s1770_s12 = inlined_call_operand.vmem [shape: f32[1,128], index: 12, kind: input, shape index: {}]   ;;  %s1771_s13 = inlined_call_operand.vmem [shape: f32[1,128], index: 13, kind: input, shape index: {}]   ;;  %s1772_s14 = inlined_call_operand.vmem [shape: bf16[128,512], index: 14, kind: input, shape index: {}]   ;;  %s1773_s15 = inlined_call_operand.vmem [shape: f32[1,512], index: 15, kind: input, shape index: {}]   ;;  %s1774_s16 = inlined_call_operand.vmem [shape: f32[1,256], index: 16, kind: input, shape index: {}]   ;;  %s1775_s17 = inlined_call_operand.vmem [shape: f32[1,256], index: 17, kind: input, shape index: {}]   ;;  %s1776_s18 = inlined_call_operand.hbm [shape: f32[8,256], index: 18, kind: output, shape index: {0}]   ;;  %s1777_s19 = inlined_call_operand.hbm [shape: f32[8,128], index: 19, kind: output, shape index: {1}]   ;;  %s1778_s20 = inlined_call_operand.hbm [shape: f32[8,256], index: 20, kind: output, shape index: {2}]   ;;  %s1779_s21 = inlined_call_operand.hbm [shape: f32[8,256], index: 21, kind: output, shape index: {3}]  }
   0x1   :  { %1782 = sst [smem:[#allocation13_spill]] %s1758_s0 }
   0x2   :  { %1783 = sst [smem:[#allocation14_spill]] %s1759_s1 }
   0x3   :  { %1784 = sst [smem:[#allocation15_spill]] %s1760_s2 }
   0x4   :  { %1785 = sst [smem:[#allocation16_spill]] %s1761_s3 }
   0x5   :  { %1786 = sst [smem:[#allocation17_spill]] %s1762_s4 }
   0x6   :  { %1787 = sst [smem:[#allocation18_spill]] %s1763_s5 }
   0x7   :  { %28 = vsyncpa [#allocation4], 0 }
   0x8   :  { %29 = vsyncpa [#allocation6], 0  ;;  %s1788_s26 = sld [smem:[#allocation15_spill]]  ;;  %s1789_s22 = sld [smem:[#allocation14_spill]] }
   0xe   :  { %v1146_v0 = vld [vmem:[%s1788_s26 + $0x40] sm:$0xff]   ;;  %v1148_v2 = vld [vmem:[%s1788_s26 + $0x48] sm:$0xff]   ;;  %v1150_v4 = vld [vmem:[%s1788_s26 + $0x50] sm:$0xff]  }
   0xf   :  { %v1147_v1 = vld [vmem:[%s1788_s26] sm:$0xff]   ;;  %1059 = vmatprep.subr.bf16.mxu0 %v1146_v0  ;;  %v1149_v3 = vld [vmem:[%s1788_s26 + $0x8] sm:$0xff]   ;;  %v1151_v5 = vld [vmem:[%s1788_s26 + $0x10] sm:$0xff]  }
  0x10   :  { %1060 = vmatpush3.bf16.msra.mxu0 %v1147_v1  ;;  %v1152_v6 = vld [vmem:[%s1788_s26 + $0x58] sm:$0xff]   ;;  %v1154_v8 = vld [vmem:[%s1788_s26 + $0x60] sm:$0xff]   ;;  %v1156_v10 = vld [vmem:[%s1788_s26 + $0x68] sm:$0xff]  }
  0x11   :  { %1061 = vmatprep.subr.bf16.mxu0 %v1148_v2  ;;  %v1153_v7 = vld [vmem:[%s1788_s26 + $0x18] sm:$0xff]   ;;  %v1155_v9 = vld [vmem:[%s1788_s26 + $0x20] sm:$0xff]   ;;  %v69_v11 = vld [vmem:[%s1789_s22 + $0x8] sm:$0xff] }
  0x12   :  { %v68_v12 = vld [vmem:[%s1789_s22] sm:$0xff]  ;;  %v1157_v13 = vld [vmem:[%s1788_s26 + $0x28] sm:$0xff]   ;;  %v71_v14 = vadd.f32 1.0, %v69_v11  ;;  %v1158_v16 = vld [vmem:[%s1788_s26 + $0x70] sm:$0xff]  }
  0x13   :  { %v70_v15 = vadd.f32 1.0, %v68_v12  ;;  %v1159_v17 = vld [vmem:[%s1788_s26 + $0x30] sm:$0xff]   ;;  %v1160_v18 = vld [vmem:[%s1788_s26 + $0x78] sm:$0xff]  }
  0x14   :  { %1062 = vmatpush3.bf16.msra.mxu0 %v1149_v3  ;;  %1226 = vlog2.f32 %v71_v14  ;;  %v1161_v19 = vld [vmem:[%s1788_s26 + $0x38] sm:$0xff]  }
  0x15   :  { %1063 = vmatprep.subr.bf16.mxu0 %v1150_v4  ;;  %1228 = vlog2.f32 %v70_v15 }
  0x18   :  { %1064 = vmatpush3.bf16.msra.mxu0 %v1151_v5 }
  0x19   :  { %1065 = vmatprep.subr.bf16.mxu0 %v1152_v6 }
  0x1c   :  { %1066 = vmatpush3.bf16.msra.mxu0 %v1153_v7 }
  0x1d   :  { %1067 = vmatprep.subr.bf16.mxu0 %v1154_v8 }
  0x1e   :  { %v1227_v20 = vpop.eup %1226 }
  0x1f   :  { %v1229_v21 = vpop.eup %1228  ;;  %v75_v22 = vmul.f32 0.6931472, %v1227_v20 }
  0x20   :  { %1068 = vmatpush3.bf16.msra.mxu0 %v1155_v9  ;;  %v73_v23 = vmul.f32 0.6931472, %v1229_v21 }
  0x21   :  { %1069 = vmatprep.subr.bf16.mxu0 %v1156_v10  ;;  %v80_v24 = vpack.c.bf16 %v75_v22, %v75_v22  ;;  %77 = vst [vmem:[#allocation3 + $0x8] sm:$0xff] %v75_v22 }
  0x22   :  { %v79_v25 = vpack.c.bf16 %v73_v23, %v73_v23  ;;  %76 = vst [vmem:[#allocation3] sm:$0xff] %v73_v23 }
  0x23   :  { %248 = vmatprep.mubr.bf16.mxu0 %v80_v24 }
  0x24   :  { %1070 = vmatpush3.bf16.msra.mxu0 %v1157_v13 }
  0x25   :  { %1071 = vmatprep.subr.bf16.mxu0 %v1158_v16 }
  0x28   :  { %1072 = vmatpush3.bf16.msra.mxu0 %v1159_v17 }
  0x29   :  { %1073 = vmatprep.subr.bf16.mxu0 %v1160_v18 }
  0x2c   :  { %1074 = vmatpush3.bf16.msra.mxu0 %v1161_v19 }
  0x2f   :  { %249 = vmatmul.mubr.bf16.vlgmr.msra.gmra.mrb[0].mxu0 %v79_v25 }
  0x30   :  { %30 = vsyncpa [#allocation9], 0  ;;  %s1790_s23 = sld [smem:[#allocation16_spill]]  ;;  %v1162_v33 = vld [vmem:[%s1764_s6] sm:$0xff]   ;;  %v1338_v34 = vmov 0.0   ;;  %v1163_v35 = vld [vmem:[%s1764_s6 + $0x8] sm:$0xff]  }
  0x31   :  { %1099 = vmatprep.subr.bf16.mxu1 %v1338_v34  ;;  %1119 = vmatprep.subr.bf16.mxu0 %v1338_v34  ;;  %v1164_v40 = vld [vmem:[%s1764_s6 + $0x10] sm:$0xff]   ;;  %v1165_v41 = vld [vmem:[%s1764_s6 + $0x18] sm:$0xff]   ;;  %vm1339_vm0 = vmmov 0   ;;  %v1166_v42 = vld [vmem:[%s1764_s6 + $0x20] sm:$0xff]   ;;  %s1791_s2 = sld [smem:[#allocation17_spill]]  ;;  %s1792_s3 = sld [smem:[#allocation18_spill]] }
  0x32   :  { %1100 = vmatpush3.bf16.msra.mxu1 %v1162_v33  ;;  %1115 = vmatprep.mubr.msk.bf16.mxu1 %vm1339_vm0, %v1338_v34  ;;  %v1167_v43 = vld [vmem:[%s1764_s6 + $0x28] sm:$0xff]   ;;  %v1168_v44 = vld [vmem:[%s1764_s6 + $0x30] sm:$0xff]   ;;  %v1169_v45 = vld [vmem:[%s1764_s6 + $0x38] sm:$0xff]  }
  0x33   :  { %1101 = vmatprep.subr.bf16.mxu1 %v1338_v34  ;;  %1135 = vmatprep.mubr.msk.bf16.mxu0 %vm1339_vm0, %v1338_v34  ;;  %v1005_v57 = vld [vmem:[%s1765_s7] ss:$0 sm:$0xff]  ;;  %v1171_v0 = vld [vmem:[%s1768_s10 + $0x8] sm:$0xff]   ;;  %v1172_v5 = vld [vmem:[%s1768_s10 + $0x10] sm:$0xff]  }
  0x34   :  { %v1170_v63 = vld [vmem:[%s1768_s10] sm:$0xff]   ;;  %v1173_v6 = vld [vmem:[%s1768_s10 + $0x18] sm:$0xff]   ;;  %v1175_v8 = vld [vmem:[%s1768_s10 + $0x28] sm:$0xff]  }
  0x35   :  { %1120 = vmatpush3.bf16.msra.mxu0 %v1170_v63  ;;  %v1174_v7 = vld [vmem:[%s1768_s10 + $0x20] sm:$0xff]   ;;  %v1176_v9 = vld [vmem:[%s1768_s10 + $0x30] sm:$0xff]   ;;  %v1177_v10 = vld [vmem:[%s1768_s10 + $0x38] sm:$0xff]  }
  0x36   :  { %v986_v28 = vld [vmem:[%s1790_s23] ss:$0 sm:$0xff]  ;;  %1102 = vmatpush3.bf16.msra.mxu1 %v1163_v35  ;;  %1121 = vmatprep.subr.bf16.mxu0 %v1338_v34  ;;  %v1189_v33 = vld [vmem:[%s1772_s14 + $0x2c] ss:$16 sps:$4 sm:$0xff]   ;;  %v1187_v35 = vld [vmem:[%s1772_s14 + $0x28] ss:$16 sps:$4 sm:$0xff]  }
  0x37   :  { %1103 = vmatprep.subr.bf16.mxu1 %v1338_v34  ;;  %v1003_v50 = vld [vmem:[%s1791_s2] ss:$0 sm:$0xff] }
  0x38   :  { %v1004_v52 = vld [vmem:[%s1792_s3] ss:$0 sm:$0xff] }
  0x39   :  { %1122 = vmatpush3.bf16.msra.mxu0 %v1171_v0  ;;  %v1014_v15 = vld [vmem:[%s1766_s8] ss:$0 sm:$0xff]  ;;  %v1223_v0 = vld [vmem:[%s1772_s14 + $0xe8] ss:$16 sps:$4 sm:$0xff]  }
  0x3a   :  { %1104 = vmatpush3.bf16.msra.mxu1 %v1164_v40  ;;  %1123 = vmatprep.subr.bf16.mxu0 %v1338_v34  ;;  %v1015_v17 = vld [vmem:[%s1767_s9] ss:$0 sm:$0xff]  ;;  %v1192_v40 = vld [vmem:[%s1772_s14 + $0x44] ss:$16 sps:$4 sm:$0xff]  }
  0x3b   :  { %1105 = vmatprep.subr.bf16.mxu1 %v1338_v34  ;;  %v1016_v22 = vld [vmem:[%s1769_s11] ss:$0 sm:$0xff]  ;;  %s1342_s11 = smov [#allocation3]  }
  0x3c   :  { %v1220_v63 = vld [vmem:[%s1772_s14 + $0xe0] ss:$16 sps:$4 sm:$0xff]   ;;  %s937_s1 = sshll.u32 %s1342_s11, 4  ;;  %s938_s1 = int_to_ptr.vmem [resolvable:$true] %s937_s1 }
  0x3d   :  { %1124 = vmatpush3.bf16.msra.mxu0 %v1172_v5  ;;  %v1025_v5 = vld [vmem:[%s1770_s12] ss:$0 sm:$0xff] }
  0x3e   :  { %1106 = vmatpush3.bf16.msra.mxu1 %v1165_v41  ;;  %1125 = vmatprep.subr.bf16.mxu0 %v1338_v34  ;;  %v1195_v41 = vld [vmem:[%s1772_s14 + $0x4c] ss:$16 sps:$4 sm:$0xff]  }
  0x3f   :  { %1107 = vmatprep.subr.bf16.mxu1 %v1338_v34 }
  0x41   :  { %1126 = vmatpush3.bf16.msra.mxu0 %v1173_v6 }
  0x42   :  { %1108 = vmatpush3.bf16.msra.mxu1 %v1166_v42  ;;  %1127 = vmatprep.subr.bf16.mxu0 %v1338_v34  ;;  %v1190_v42 = vld [vmem:[%s1772_s14 + $0x40] ss:$16 sps:$4 sm:$0xff]  }
  0x43   :  { %1109 = vmatprep.subr.bf16.mxu1 %v1338_v34 }
  0x45   :  { %1128 = vmatpush3.bf16.msra.mxu0 %v1174_v7  ;;  %v1026_v7 = vld [vmem:[%s1771_s13] ss:$0 sm:$0xff] }
  0x46   :  { %1110 = vmatpush3.bf16.msra.mxu1 %v1167_v43  ;;  %1129 = vmatprep.subr.bf16.mxu0 %v1338_v34  ;;  %v1193_v43 = vld [vmem:[%s1772_s14 + $0x48] ss:$16 sps:$4 sm:$0xff]  }
  0x47   :  { %1111 = vmatprep.subr.bf16.mxu1 %v1338_v34 }
  0x49   :  { %1130 = vmatpush3.bf16.msra.mxu0 %v1175_v8 }
  0x4a   :  { %1112 = vmatpush3.bf16.msra.mxu1 %v1168_v44  ;;  %1131 = vmatprep.subr.bf16.mxu0 %v1338_v34  ;;  %v1198_v44 = vld [vmem:[%s1772_s14 + $0x64] ss:$16 sps:$4 sm:$0xff]  }
  0x4b   :  { %1113 = vmatprep.subr.bf16.mxu1 %v1338_v34 }
  0x4d   :  { %1132 = vmatpush3.bf16.msra.mxu0 %v1176_v9 }
  0x4e   :  { %1114 = vmatpush3.bf16.msra.mxu1 %v1169_v45  ;;  %1133 = vmatprep.subr.bf16.mxu0 %v1338_v34  ;;  %v1184_v34 = vld [vmem:[%s1772_s14 + $0x20] ss:$16 sps:$4 sm:$0xff]   ;;  %v1201_v45 = vld [vmem:[%s1772_s14 + $0x6c] ss:$16 sps:$4 sm:$0xff]  }
  0x51   :  { %1134 = vmatpush3.bf16.msra.mxu0 %v1177_v10 }
 0x102   :  { %v1075_v26 = vpop.f32.mrb[0].mxu0 }
 0x103   :  { %v1076_v27 = vpop.f32.mrb[1].mxu0 }
 0x104   :  { %v1077_v29 = vadd.f32 %v1076_v27, %v1075_v26  ;;  %v1078_v30 = vpop.f32.mrb[2].mxu0 }
 0x105   :  { %v1079_v31 = vpop.f32.mrb[3].mxu0  ;;  %v1181_v30 = vld [vmem:[%s1772_s14 + $0x8] ss:$16 sps:$4 sm:$0xff]  }
 0x106   :  { %v251_v32 = vadd.f32 %v1077_v29, %v986_v28  ;;  %v1178_v28 = vld [vmem:[%s1772_s14] ss:$16 sps:$4 sm:$0xff]   ;;  %v1180_v29 = vld [vmem:[%s1772_s14 + $0x4] ss:$16 sps:$4 sm:$0xff]   ;;  %v1183_v31 = vld [vmem:[%s1772_s14 + $0xc] ss:$16 sps:$4 sm:$0xff]  }
 0x107   :  { %781 = vmatprep.subr.bf16.mxu1 %v1180_v29  ;;  %822 = vmatprep.subr.bf16.mxu0 %v1183_v31 }
 0x108   :  { %258 = vadd.xlane.f32.xlu0 %v251_v32 }
 0x195   :  { %v259_v36 = vpop.xlane.xlu0 %258 }
 0x196   :  { %v261_v37 = vmul.f32 0.0078125, %v259_v36 }
 0x198   :  { %v262_v38 = vsub.f32 %v251_v32, %v261_v37  ;;  %v1186_v32 = vld [vmem:[%s1772_s14 + $0x24] ss:$16 sps:$4 sm:$0xff]  }
 0x19a   :  { %v263_v39 = vmul.f32 %v262_v38, %v262_v38 }
 0x19c   :  { %264 = vadd.xlane.f32.xlu0 %v263_v39 }
 0x229   :  { %v265_v46 = vpop.xlane.xlu0 %264 }
 0x22a   :  { %v266_v47 = vmul.f32 0.0078125, %v265_v46  ;;  %v1196_v46 = vld [vmem:[%s1772_s14 + $0x60] ss:$16 sps:$4 sm:$0xff]  }
 0x22c   :  { %v267_v48 = vadd.f32 1e-05, %v266_v47  ;;  %v1199_v47 = vld [vmem:[%s1772_s14 + $0x68] ss:$16 sps:$4 sm:$0xff]  }
 0x22e   :  { %1230 = vrsqrt.f32 %v267_v48  ;;  %v1204_v48 = vld [vmem:[%s1772_s14 + $0x84] ss:$16 sps:$4 sm:$0xff]  }
 0x238   :  { %v1231_v49 = vpop.eup %1230 }
 0x239   :  { %v269_v51 = vmul.f32 %v1231_v49, %v262_v38  ;;  %v1207_v49 = vld [vmem:[%s1772_s14 + $0x8c] ss:$16 sps:$4 sm:$0xff]  }
 0x23b   :  { %v276_v53 = vmul.f32 %v1003_v50, %v269_v51  ;;  %v1202_v50 = vld [vmem:[%s1772_s14 + $0x80] ss:$16 sps:$4 sm:$0xff]   ;;  %v1205_v51 = vld [vmem:[%s1772_s14 + $0x88] ss:$16 sps:$4 sm:$0xff]  }
 0x23d   :  { %v283_v54 = vadd.f32 %v1004_v52, %v276_v53  ;;  %v1210_v52 = vld [vmem:[%s1772_s14 + $0xa4] ss:$16 sps:$4 sm:$0xff]   ;;  %v1213_v53 = vld [vmem:[%s1772_s14 + $0xac] ss:$16 sps:$4 sm:$0xff]  }
 0x23f   :  { %v284_v55 = vmax.f32 %v283_v54, 0.0  ;;  %v1208_v54 = vld [vmem:[%s1772_s14 + $0xa0] ss:$16 sps:$4 sm:$0xff]  }
 0x241   :  { %v285_v56 = vpack.c.bf16 %v284_v55, %v284_v55  ;;  %v1211_v55 = vld [vmem:[%s1772_s14 + $0xa8] ss:$16 sps:$4 sm:$0xff]  }
 0x243   :  { %1116 = vmatmul.mubr.bf16.vlgmr.msra.gmra.mrb[0].mxu1 %v285_v56  ;;  %v1216_v56 = vld [vmem:[%s1772_s14 + $0xc4] ss:$16 sps:$4 sm:$0xff]  }
 0x244   :  { %782 = vmatpush1.bf16.msra.mxu1 %v1178_v28 }
 0x245   :  { %783 = vmatprep.subr.bf16.mxu1 %v1186_v32 }
 0x248   :  { %784 = vmatpush1.bf16.msra.mxu1 %v1184_v34 }
 0x249   :  { %785 = vmatprep.subr.bf16.mxu1 %v1192_v40 }
 0x24c   :  { %786 = vmatpush1.bf16.msra.mxu1 %v1190_v42 }
 0x24d   :  { %787 = vmatprep.subr.bf16.mxu1 %v1198_v44 }
 0x250   :  { %788 = vmatpush1.bf16.msra.mxu1 %v1196_v46  ;;  %v863_v46 = vld [vmem:[%s1774_s16] sm:$0x3]  ;;  %s1341_s16 = smov [#allocation5]  }
 0x251   :  { %789 = vmatprep.subr.bf16.mxu1 %v1204_v48 }
 0x254   :  { %790 = vmatpush1.bf16.msra.mxu1 %v1202_v50 }
 0x255   :  { %791 = vmatprep.subr.bf16.mxu1 %v1210_v52 }
 0x258   :  { %792 = vmatpush1.bf16.msra.mxu1 %v1208_v54 }
 0x259   :  { %793 = vmatprep.subr.bf16.mxu1 %v1216_v56 }
 0x316   :  { %v391_v58 = vpop.f32.mrb[0].mxu1 }
 0x317   :  { %v392_v59 = vadd.f32 %v1005_v57, %v391_v58  ;;  %v1117_v60 = vpop.f32.mrb[1].mxu1  ;;  %v1219_v57 = vld [vmem:[%s1772_s14 + $0xcc] ss:$16 sps:$4 sm:$0xff]   ;;  %v1340_v58 = vmov 0  }
 0x318   :  { %v394_v61 = vpop.f32.mrb[2].mxu1  ;;  %813 = vmatprep.mubr.bf16.mxu1 %v1340_v58  ;;  %v1217_v60 = vld [vmem:[%s1772_s14 + $0xc8] ss:$16 sps:$4 sm:$0xff]  }
 0x319   :  { %399 = vadd.xlane.f32.xlu1 %v392_v59  ;;  %v1118_v62 = vpop.f32.mrb[3].mxu1  ;;  %v1222_v61 = vld [vmem:[%s1772_s14 + $0xe4] ss:$16 sps:$4 sm:$0xff]  }
 0x31a   :  { %v1225_v62 = vld [vmem:[%s1772_s14 + $0xec] ss:$16 sps:$4 sm:$0xff]  }
 0x3a6   :  { %v400_v1 = vpop.xlane.xlu1 %399 }
 0x3a7   :  { %v401_v2 = vmul.f32 0.0078125, %v400_v1 }
 0x3a9   :  { %v402_v3 = vsub.f32 %v392_v59, %v401_v2  ;;  %v1214_v59 = vld [vmem:[%s1772_s14 + $0xc0] ss:$16 sps:$4 sm:$0xff]  }
 0x3aa   :  { %794 = vmatpush1.bf16.msra.mxu1 %v1214_v59 }
 0x3ab   :  { %v403_v4 = vmul.f32 %v402_v3, %v402_v3  ;;  %795 = vmatprep.subr.bf16.mxu1 %v1222_v61 }
 0x3ad   :  { %404 = vadd.xlane.f32.xlu1 %v403_v4 }
 0x3ae   :  { %796 = vmatpush1.bf16.msra.mxu1 %v1220_v63 }
 0x43a   :  { %v405_v11 = vpop.xlane.xlu1 %404 }
 0x43b   :  { %v406_v12 = vmul.f32 0.0078125, %v405_v11 }
 0x43d   :  { %v407_v13 = vadd.f32 1e-05, %v406_v12  ;;  %v601_v12 = vlaneseq }
 0x43f   :  { %1232 = vrsqrt.f32 %v407_v13  ;;  %v602_v13 = vshrl.u32 %v601_v12, 7 }
 0x449   :  { %v1233_v14 = vpop.eup %1232 }
 0x44a   :  { %v409_v16 = vmul.f32 %v1233_v14, %v402_v3  ;;  %v603_v14 = vsub.s32 0, %v602_v13 }
 0x44c   :  { %v416_v18 = vmul.f32 %v1014_v15, %v409_v16  ;;  %v611_v15 = vsub.s32 2, %v602_v13  ;;  %v599_v16 = vld [vmem:[%s1773_s15] sm:$0xf]  ;;  %v886_v48 = vrot.slane %v863_v46, %v603_v14 }
 0x44e   :  { %v423_v19 = vadd.f32 %v1015_v17, %v416_v18  ;;  %v607_v17 = vsub.s32 1, %v602_v13  ;;  %v615_v18 = vsub.s32 3, %v602_v13 }
 0x450   :  { %v424_v20 = vmax.f32 %v423_v19, 0.0  ;;  %v604_v19 = vrot.slane %v599_v16, %v603_v14 }
 0x452   :  { %v426_v21 = vpack.c.bf16 %v424_v20, %v424_v20  ;;  %425 = vst [vmem:[#allocation5] sm:$0xff] %v424_v20  ;;  %v612_v20 = vrot.slane %v599_v16, %v611_v15 }
 0x454   :  { %1136 = vmatmul.mubr.bf16.vlgmr.msra.gmra.mrb[4].mxu0 %v426_v21  ;;  %v608_v21 = vrot.slane %v599_v16, %v607_v17 }
 0x455   :  { %823 = vmatpush1.bf16.msra.mxu0 %v1181_v30  ;;  %854 = vmatprep.mubr.bf16.mxu0 %v1340_v58 }
 0x456   :  { %824 = vmatprep.subr.bf16.mxu0 %v1189_v33 }
 0x459   :  { %825 = vmatpush1.bf16.msra.mxu0 %v1187_v35 }
 0x45a   :  { %826 = vmatprep.subr.bf16.mxu0 %v1195_v41 }
 0x45d   :  { %827 = vmatpush1.bf16.msra.mxu0 %v1193_v43 }
 0x45e   :  { %828 = vmatprep.subr.bf16.mxu0 %v1201_v45 }
 0x461   :  { %829 = vmatpush1.bf16.msra.mxu0 %v1199_v47  ;;  %v864_v47 = vld [vmem:[%s1775_s17] sm:$0x3]  ;;  %s947_s17 = sshll.u32 %s1341_s16, 4  ;;  %s948_s17 = int_to_ptr.vmem [resolvable:$true] %s947_s17 }
 0x462   :  { %830 = vmatprep.subr.bf16.mxu0 %v1207_v49  ;;  %v890_v49 = vrot.slane %v863_v46, %v607_v17  ;;  %v903_v54 = vrot.slane %v864_v47, %v607_v17  ;;  %s1244_s24 = scalar_lea.vmem %s948_s17, 128  ;;  %p1249_p1 = scmp.lt.s32.totalorder %s948_s17, %s948_s17 }
 0x463   :  { %p1245_p0 = scmp.ne.s32.totalorder %s948_s17, %s1244_s24  ;;  %p1250_p2 = scmp.lt.s32.totalorder %s1244_s24, %s1244_s24 }
 0x465   :  { %831 = vmatpush1.bf16.msra.mxu0 %v1205_v51  ;;  %p1251_p3 = por %p1250_p2, %p1249_p1 }
 0x466   :  { %832 = vmatprep.subr.bf16.mxu0 %v1213_v53  ;;  %v899_v53 = vrot.slane %v864_v47, %v603_v14 }
 0x467   :  { %p1252_p4 = pnand %p1251_p3, %p1245_p0 }
 0x469   :  { %833 = vmatpush1.bf16.msra.mxu0 %v1211_v55 }
 0x46a   :  { %834 = vmatprep.subr.bf16.mxu0 %v1219_v57 }
 0x46d   :  { %835 = vmatpush1.bf16.msra.mxu0 %v1217_v60 }
 0x46e   :  { %836 = vmatprep.subr.bf16.mxu0 %v1225_v62 }
 0x471   :  { %837 = vmatpush1.bf16.msra.mxu0 %v1223_v0 }
 0x527   :  { %v532_v23 = vpop.f32.mrb[4].mxu0 }
 0x528   :  { %v533_v24 = vadd.f32 %v1016_v22, %v532_v23  ;;  %v1137_v25 = vpop.f32.mrb[5].mxu0  ;;  %v616_v22 = vrot.slane %v599_v16, %v615_v18 }
 0x529   :  { %v535_v26 = vpop.f32.mrb[6].mxu0 }
 0x52a   :  { %540 = vadd.xlane.f32.xlu0 %v533_v24  ;;  %v1138_v27 = vpop.f32.mrb[7].mxu0 }
 0x5b7   :  { %v541_v36 = vpop.xlane.xlu0 %540 }
 0x5b8   :  { %v542_v37 = vmul.f32 0.0078125, %v541_v36 }
 0x5ba   :  { %v543_v38 = vsub.f32 %v533_v24, %v542_v37 }
 0x5bc   :  { %v544_v39 = vmul.f32 %v543_v38, %v543_v38 }
 0x5be   :  { %545 = vadd.xlane.f32.xlu1 %v544_v39 }
 0x64b   :  { %v546_v1 = vpop.xlane.xlu1 %545 }
 0x64c   :  { %v547_v2 = vmul.f32 0.0078125, %v546_v1 }
 0x64e   :  { %v548_v3 = vadd.f32 1e-05, %v547_v2 }
 0x650   :  { %1234 = vrsqrt.f32 %v548_v3 }
 0x65a   :  { %v1235_v4 = vpop.eup %1234 }
 0x65b   :  { %v550_v6 = vmul.f32 %v1235_v4, %v543_v38 }
 0x65d   :  { %v557_v8 = vmul.f32 %v1025_v5, %v550_v6 }
 0x65f   :  { %v564_v9 = vadd.f32 %v1026_v7, %v557_v8 }
 0x661   :  { %v565_v10 = vmax.f32 %v564_v9, 0.0 }
 0x663   :  { %v566_v11 = vpack.c.bf16 %v565_v10, %v565_v10 }
 0x665   :  { %814 = vmatmul.mubr.bf16.vlgmr.msra.gmra.mrb[4].mxu1 %v566_v11  ;;  %855 = vmatmul.mubr.bf16.vlgmr.msra.gmra.mrb[8].mxu0 %v566_v11 }
 0x738   :  { %v815_v23 = vpop.f32.mrb[4].mxu1  ;;  %v856_v24 = vpop.f32.mrb[8].mxu0 }
 0x739   :  { %v816_v25 = vadd.f32 %v815_v23, %v604_v19  ;;  %v857_v26 = vadd.f32 %v856_v24, %v612_v20  ;;  %v817_v27 = vpop.f32.mrb[5].mxu1  ;;  %v858_v28 = vpop.f32.mrb[9].mxu0 }
 0x73a   :  { %v818_v29 = vadd.f32 %v817_v27, %v608_v21  ;;  %v859_v30 = vadd.f32 %v858_v28, %v616_v22  ;;  %v819_v31 = vpop.f32.mrb[6].mxu1  ;;  %v860_v32 = vpop.f32.mrb[10].mxu0 }
 0x73b   :  { %910 = vst [vmem:[#allocation8] sm:$0xff] %v857_v26  ;;  %v820_v33 = vpop.f32.mrb[7].mxu1  ;;  %v861_v34 = vpop.f32.mrb[11].mxu0 }
 0x73c   :  { %911 = vst [vmem:[#allocation8 + $0x8] sm:$0xff] %v859_v30  ;;  %v865_v35 = vadd.f32 %v818_v29, %v816_v25 }
 0x73e   :  { %866 = vadd.xlane.f32.xlu0 %v865_v35 }
 0x7cb   :  { %v867_v36 = vpop.xlane.xlu0 %866 }
 0x7cc   :  { %v869_v37 = vmul.f32 0.00390625, %v867_v36 }
 0x7ce   :  { %v870_v38 = vsub.f32 %v816_v25, %v869_v37  ;;  %v871_v39 = vsub.f32 %v818_v29, %v869_v37 }
 0x7d0   :  { %v872_v40 = vmul.f32 %v870_v38, %v870_v38  ;;  %v873_v41 = vmul.f32 %v871_v39, %v871_v39 }
 0x7d2   :  { %v874_v42 = vadd.f32 %v873_v41, %v872_v40 }
 0x7d4   :  { %875 = vadd.xlane.f32.xlu1 %v874_v42 }
 0x861   :  { %v876_v43 = vpop.xlane.xlu1 %875 }
 0x862   :  { %v877_v44 = vmul.f32 0.00390625, %v876_v43 }
 0x864   :  { %v878_v45 = vadd.f32 1e-05, %v877_v44 }
 0x866   :  { %1236 = vrsqrt.f32 %v878_v45 }
 0x870   :  { %v1237_v50 = vpop.eup %1236 }
 0x871   :  { %v880_v51 = vmul.f32 %v1237_v50, %v870_v38  ;;  %v881_v52 = vmul.f32 %v1237_v50, %v871_v39 }
 0x873   :  { %v893_v55 = vmul.f32 %v886_v48, %v880_v51  ;;  %v894_v56 = vmul.f32 %v890_v49, %v881_v52 }
 0x875   :  { %v906_v57 = vadd.f32 %v899_v53, %v893_v55  ;;  %v907_v58 = vadd.f32 %v903_v54, %v894_v56 }
 0x877   :  { %v908_v59 = vmax.f32 %v906_v57, 0.0  ;;  %v909_v60 = vmax.f32 %v907_v58, 0.0 }
 0x879   :  { %v912_v61 = vmax.f32 %v908_v59, %v909_v60 }
 0x87b   :  { %913 = vmax.xlane.f32.xlu0 %v912_v61 }
 0x908   :  { %v914_v62 = vpop.xlane.xlu0 %913 }
 0x909   :  { %v915_v63 = vsub.f32 %v908_v59, %v914_v62  ;;  %v916_v0 = vsub.f32 %v909_v60, %v914_v62 }
 0x90b   :  { %v917_v1 = vmul.f32 1.442695, %v915_v63  ;;  %v919_v2 = vmul.f32 1.442695, %v916_v0 }
 0x90d   :  { %1238 = vpow2.f32 %v917_v1 }
 0x90e   :  { %1240 = vpow2.f32 %v919_v2 }
 0x917   :  { %v1239_v3 = vpop.eup %1238 }
 0x918   :  { %v1241_v4 = vpop.eup %1240 }
 0x919   :  { %v921_v5 = vadd.f32 %v1241_v4, %v1239_v3 }
 0x91b   :  { %922 = vadd.xlane.f32.xlu1 %v921_v5 }
 0x91c   :  { %1255 = shalt.err (!%p1252_p4)
}
 0x91d   :  { %s1256_s27 = scalar_lea.hbm %s1777_s19, 128 }
 0x91e   :  { %p1257_p5 = scmp.ne.s32.totalorder %s1777_s19, %s1256_s27  ;;  %p1260_p6 = scmp.lt.u32.totalorder %s1256_s27, %s1777_s19 }
 0x920   :  { %p1262_p7 = pnand %p1260_p6, %p1257_p5 }
 0x922   :  { %1265 = shalt.err (!%p1262_p7)
}
 0x923   :  { %950 = dma.vmem_to_hbm [thread:$0]  %s948_s17, 128, %s1777_s19, [#allocation6]  }
 0x924   :  { %s1266_s10 = scalar_lea.vmem %s938_s1, 256  ;;  %p1271_p9 = scmp.lt.s32.totalorder %s938_s1, %s938_s1 }
 0x925   :  { %p1267_p8 = scmp.ne.s32.totalorder %s938_s1, %s1266_s10  ;;  %p1272_p10 = scmp.lt.s32.totalorder %s1266_s10, %s1266_s10 }
 0x927   :  { %p1273_p11 = por %p1272_p10, %p1271_p9 }
 0x929   :  { %p1274_p12 = pnand %p1273_p11, %p1267_p8 }
 0x92b   :  { %1277 = shalt.err (!%p1274_p12)
}
 0x92c   :  { %s1278_s7 = scalar_lea.hbm %s1776_s18, 256 }
 0x92d   :  { %p1279_p13 = scmp.ne.s32.totalorder %s1776_s18, %s1278_s7  ;;  %p1282_p0 = scmp.lt.u32.totalorder %s1278_s7, %s1776_s18 }
 0x92f   :  { %p1284_p1 = pnand %p1282_p0, %p1279_p13 }
 0x931   :  { %1287 = shalt.err (!%p1284_p1)
}
 0x932   :  { %940 = dma.vmem_to_hbm [thread:$0]  %s938_s1, 256, %s1776_s18, [#allocation4]  }
 0x933   :  { %s1343_s12 = smov [#allocation8]  }
 0x934   :  { %s967_s13 = sshll.u32 %s1343_s12, 4  ;;  %s968_s13 = int_to_ptr.vmem [resolvable:$true] %s967_s13 }
 0x935   :  { %s1288_s15 = scalar_lea.vmem %s968_s13, 256  ;;  %p1293_p3 = scmp.lt.s32.totalorder %s968_s13, %s968_s13 }
 0x936   :  { %p1289_p2 = scmp.ne.s32.totalorder %s968_s13, %s1288_s15  ;;  %p1294_p4 = scmp.lt.s32.totalorder %s1288_s15, %s1288_s15 }
 0x938   :  { %p1295_p5 = por %p1294_p4, %p1293_p3 }
 0x93a   :  { %p1296_p6 = pnand %p1295_p5, %p1289_p2 }
 0x93c   :  { %1299 = shalt.err (!%p1296_p6)
}
 0x93d   :  { %s1300_s17 = scalar_lea.hbm %s1779_s21, 256 }
 0x93e   :  { %p1301_p7 = scmp.ne.s32.totalorder %s1779_s21, %s1300_s17  ;;  %p1304_p8 = scmp.lt.u32.totalorder %s1300_s17, %s1779_s21 }
 0x940   :  { %p1306_p9 = pnand %p1304_p8, %p1301_p7 }
 0x942   :  { %1309 = shalt.err (!%p1306_p9)
}
 0x943   :  { %970 = dma.vmem_to_hbm [thread:$0]  %s968_s13, 256, %s1779_s21, [#allocation9]  }
 0x944   :  { %s1793_s6 = sld [smem:[#allocation13_spill]]  ;;  %s1344_s28 = smov [#allocation7]  }
 0x945   :  { %s957_s29 = sshll.u32 %s1344_s28, 4  ;;  %s958_s29 = int_to_ptr.vmem [resolvable:$true] %s957_s29 }
 0x946   :  { %s1310_s0 = scalar_lea.vmem %s958_s29, 256  ;;  %p1315_p11 = scmp.lt.s32.totalorder %s958_s29, %s958_s29 }
 0x947   :  { %p1311_p10 = scmp.ne.s32.totalorder %s958_s29, %s1310_s0  ;;  %p1316_p12 = scmp.lt.s32.totalorder %s1310_s0, %s1310_s0 }
 0x949   :  { %p1317_p13 = por %p1316_p12, %p1315_p11 }
 0x94a   :  { %v924_v7 = vstv %s1793_s6 }
 0x94b   :  { %p1318_p0 = pnand %p1317_p13, %p1311_p10 }
 0x9a8   :  { %v923_v6 = vpop.xlane.xlu1 %922 }
 0x9a9   :  { %1242 = vrcp.f32 %v923_v6 }
 0x9b3   :  { %v1243_v8 = vpop.eup %1242 }
 0x9b4   :  { %v926_v9 = vmul.f32 %v1243_v8, %v924_v7 }
 0x9b6   :  { %v927_v10 = vmul.f32 %v1239_v3, %v926_v9  ;;  %v928_v11 = vmul.f32 %v1241_v4, %v926_v9 }
 0x9b8   :  { %929 = vst [vmem:[#allocation7] sm:$0xff] %v927_v10  ;;  %930 = vst [vmem:[#allocation7 + $0x8] sm:$0xff] %v928_v11 }
 0x9b9   :  { %1321 = shalt.err (!%p1318_p0)
}
 0x9ba   :  { %s1322_s10 = scalar_lea.hbm %s1778_s20, 256 }
 0x9bb   :  { %p1323_p1 = scmp.ne.s32.totalorder %s1778_s20, %s1322_s10  ;;  %p1326_p2 = scmp.lt.u32.totalorder %s1322_s10, %s1778_s20 }
 0x9bd   :  { %p1328_p3 = pnand %p1326_p2, %p1323_p1 }
 0x9bf   :  { %1331 = shalt.err (!%p1328_p3)
}
 0x9c0   :  { %960 = dma.vmem_to_hbm [thread:$0]  %s958_s29, 256, %s1778_s20, [#allocation6]  }
 0x9c1   :  { %1332 = dma.done.wait [#allocation4], 256  }
 0x9c2   :  { %1333 = vsyncadd [#allocation4], 4294967040 }
 0x9c3   :  { %1334 = dma.done.wait [#allocation6], 384  }
 0x9c4   :  { %1335 = vsyncadd [#allocation6], 4294966912 }
 0x9c5   :  { %1336 = dma.done.wait [#allocation9], 256  }
 0x9c6   :  { %1337 = vsyncadd [#allocation9], 4294967040 }
 0x9c7   :  { %983 = vsyncpa [#allocation4], 1 }
 0x9c8   :  { %984 = vsyncpa [#allocation6], 1 }
 0x9c9   :  { %985 = vsyncpa [#allocation9], 1 }

</bundles_post_ra>
